<compile_context>
chip_gen: v5e
topology: v5e:2x2
jax: 0.10.0
libtpu: 0.0.40
codegen_flags: <defaults>
</compile_context>

<pallas_src>
import functools

import jax
import jax.numpy as jnp
from jax.experimental import pallas as pl
from jax.experimental.pallas import tpu as pltpu


def _round_up(x, m):
    return ((x + m - 1) // m) * m


# ----------------------------------------------------------------------------
# Fused kernel: per-row spatial mean for n_sources [R, L] inputs.
# Grid = (row tiles [parallel], reduction tiles over L [arbitrary]).
# ----------------------------------------------------------------------------
def _fused_mean_kernel(*refs, n_sources, n_chunks, last_step, rem, inv_l,
                       need_mask):
    x_refs = refs[:n_sources]
    o_refs = refs[n_sources:2 * n_sources]
    acc_refs = refs[2 * n_sources:]          # empty when last_step == 0

    j = pl.program_id(1)
    scale = jnp.float32(inv_l)

    def fold_unmasked(x_ref):
        # Fold the tile's 128-lane column chunks into a (tr, 128) f32 partial
        # (pure VALU adds on lane-aligned value slices; stays in vregs).
        p = x_ref[:, 0:128].astype(jnp.float32)
        for g in range(1, n_chunks):
            p = p + x_ref[:, g * 128:(g + 1) * 128].astype(jnp.float32)
        return p

    def fold_masked(x_ref):
        # Only executed on the last reduction step; `rem` (valid lanes in that
        # tile) is static, so fully-OOB chunks are skipped at trace time and
        # only the straddling chunk pays the iota + select.
        n_full = rem // 128
        part = rem % 128
        p = None
        for g in range(n_full):
            c = x_ref[:, g * 128:(g + 1) * 128].astype(jnp.float32)
            p = c if p is None else p + c
        if part:
            c = x_ref[:, n_full * 128:(n_full + 1) * 128].astype(jnp.float32)
            lane = jax.lax.broadcasted_iota(jnp.int32, c.shape, 1)
            # Select, not multiply: OOB-padded lanes may hold garbage / NaN.
            c = jnp.where(lane < part, c, jnp.float32(0.0))
            p = c if p is None else p + c
        return p

    for s in range(n_sources):
        x_ref = x_refs[s]
        o_ref = o_refs[s]

        if last_step == 0:
            # Single reduction step: no accumulator round-trip at all.
            p = fold_masked(x_ref) if need_mask else fold_unmasked(x_ref)
            o_ref[...] = jnp.sum(p, axis=1, keepdims=True) * scale
            continue

        acc_ref = acc_refs[s]

        @pl.when(j == 0)
        def _():
            acc_ref[...] = fold_unmasked(x_ref)   # direct write, no zero-init

        if need_mask:
            if last_step > 1:
                @pl.when(jnp.logical_and(j > 0, j < last_step))
                def _():
                    acc_ref[...] += fold_unmasked(x_ref)

            @pl.when(j == last_step)
            def _():
                acc_ref[...] += fold_masked(x_ref)
        else:
            @pl.when(j > 0)
            def _():
                acc_ref[...] += fold_unmasked(x_ref)

        @pl.when(j == last_step)
        def _():
            o_ref[...] = jnp.sum(acc_ref[...], axis=1, keepdims=True) * scale


def _pick_fold(n_rows, n_cols, tr):
    """Row-fold factor k: reshape [R, L] -> [R*k, L/k] (free, row-major) with
    L/k a multiple of 128, used only when rows are scarce (< one row tile)."""
    if n_rows >= tr or n_cols % 128 != 0:
        return 1
    m = n_cols // 128
    k_max = min(m, max(1, (2 * tr) // max(n_rows, 1)))
    best = 1
    for k in range(1, k_max + 1):
        if m % k == 0:
            best = k
    return best


def fused_spatial_means(xs_2d, *, tr=256, tl=4096):
    """xs_2d: list of [R, L] arrays (same shape, any float dtype).
    Returns a list of [R] float32 per-row means computed by a single fused
    pallas_call; each input is streamed from HBM once, in its native dtype."""
    n = len(xs_2d)
    R, L = xs_2d[0].shape
    for x in xs_2d:
        assert x.shape == (R, L), (x.shape, (R, L))

    # Small-R path: refold rows to fill sublanes / collapse the reduction grid.
    k = _pick_fold(R, L, tr)
    Rf, Lf = R * k, L // k
    xs_f = [x.reshape(Rf, Lf) for x in xs_2d]

    # Row tile: multiple of the dtype sublane granule (8 f32 / 16 bf16 / 32 i8).
    sub = max(max(8, 32 // x.dtype.itemsize) for x in xs_f)
    tr_eff = min(_round_up(tr, sub), _round_up(Rf, sub))
    # Lane tile: multiple of 128 (mask the last step when L doesn't divide).
    tl_eff = min(tl, _round_up(Lf, 128))

    grid_r = pl.cdiv(Rf, tr_eff)
    grid_l = pl.cdiv(Lf, tl_eff)
    need_mask = (Lf % tl_eff) != 0
    rem = Lf - (grid_l - 1) * tl_eff          # valid lanes in the last tile

    kernel = functools.partial(
        _fused_mean_kernel, n_sources=n, n_chunks=tl_eff // 128,
        last_step=grid_l - 1, rem=rem, inv_l=1.0 / L, need_mask=need_mask)

    scratch = ([pltpu.VMEM((tr_eff, 128), jnp.float32) for _ in range(n)]
               if grid_l > 1 else [])

    # Double-buffered input blocks + accumulators + output blocks (+25% slack).
    est = sum(2 * tr_eff * tl_eff * x.dtype.itemsize for x in xs_f)
    est += n * (tr_eff * 128 * 4 + 2 * tr_eff * 4)
    vmem_limit = max(32 * 1024 * 1024, min(64 * 1024 * 1024, int(est * 1.25)))

    outs = pl.pallas_call(
        kernel,
        out_shape=[jax.ShapeDtypeStruct((Rf, 1), jnp.float32)
                   for _ in range(n)],
        grid=(grid_r, grid_l),
        in_specs=[pl.BlockSpec((tr_eff, tl_eff), lambda i, j: (i, j))
                  for _ in range(n)],
        out_specs=[pl.BlockSpec((tr_eff, 1), lambda i, j: (i, 0))
                   for _ in range(n)],
        scratch_shapes=scratch,
        compiler_params=pltpu.CompilerParams(
            dimension_semantics=("parallel", "arbitrary"),
            vmem_limit_bytes=vmem_limit),
    )(*xs_f)

    # Each original row's mean = sum of its k folded-row partials (each is
    # sum(folded row) / L_original).
    return [o.reshape(R, k).sum(axis=1) for o in outs]


# ----------------------------------------------------------------------------
# SE forward (fusion_steps == 1 path).
# ----------------------------------------------------------------------------
def se_forward(x_dict, sources, params):
    srcs = sorted(sources)
    xs = [x_dict[s] for s in srcs]
    n_sources = len(srcs)
    N, C = xs[0].shape[:2]
    L = 1
    for d in xs[0].shape[2:]:
        L *= int(d)

    # Squeeze: per-source spatial means, fused into one Pallas launch.
    means = fused_spatial_means([x.reshape(N * C, L) for x in xs])
    m = jnp.concatenate([mn.reshape(N, C) for mn in means], axis=1)  # [N, Ct]

    # Excitation MLP: conv bias + eval-mode BN folded into scale/shift.
    # Tiny matmuls ([N, Ct] with Ct ~ 8) -> plain jnp per the perf review.
    (w1, b1, g1, be1, rm1, rv1, w2, b2, g2, be2, rm2, rv2) = params
    eps = 1e-5
    s1 = g1 * jax.lax.rsqrt(rv1 + eps)
    t1 = s1 * (b1 - rm1) + be1
    s2 = g2 * jax.lax.rsqrt(rv2 + eps)
    t2 = s2 * (b2 - rm2) + be2

    h = jnp.maximum(jnp.dot(m, w1.T) * s1 + t1, 0.0)   # Conv1x1 + BN1 + ReLU
    g = jnp.dot(h, w2.T) * s2 + t2                     # Conv1x1 + BN2
    w = jax.nn.sigmoid(g)                              # [N, Ct]

    # avgpool(sum_s x_s * w_s) == sum_s w_s * mean_dhw(x_s) (w is spatially
    # constant), so the gated channel means can be combined directly.
    p = w * m
    out = p.reshape(N, n_sources, C).sum(axis=1)       # [N, C]
    return out


# ----------------------------------------------------------------------------
# Pure-JAX reference replicating the full PyTorch forward (keeps spatial dims,
# multiplies, chunks, sums, then average-pools) for correctness checking.
# ----------------------------------------------------------------------------
def se_reference(x_dict, sources, params):
    srcs = sorted(sources)
    xs = [x_dict[s] for s in srcs]
    n_sources = len(srcs)
    x = jnp.concatenate(xs, axis=1).astype(jnp.float32)     # [N, Ct, D, H, W]
    m = jnp.mean(x, axis=(2, 3, 4))                          # AdaptiveAvgPool3d
    (w1, b1, g1, be1, rm1, rv1, w2, b2, g2, be2, rm2, rv2) = params
    eps = 1e-5
    h = m @ w1.T + b1
    h = g1 * (h - rm1) / jnp.sqrt(rv1 + eps) + be1
    h = jnp.maximum(h, 0.0)
    g = h @ w2.T + b2
    g = g2 * (g - rm2) / jnp.sqrt(rv2 + eps) + be2
    w = jax.nn.sigmoid(g)[:, :, None, None, None]            # [N, Ct, 1, 1, 1]
    prod = x * w
    chunks = jnp.split(prod, n_sources, axis=1)
    out = sum(chunks)                                         # [N, C, D, H, W]
    out = jnp.mean(out, axis=(2, 3, 4))                       # avg_pool+flatten
    return out


def make_params(key, in_channels, n_sources, r=4.0):
    Ct = in_channels * n_sources
    Cmid = int(Ct // r)
    assert Cmid >= 1, "reduction factor r too large for this channel count"
    k1, k2, k3, k4 = jax.random.split(key, 4)
    # Conv3d 1x1 kernels stored as 2-D [out, in] (spatial kernel dims are 1).
    w1 = 0.3 * jax.random.normal(k1, (Cmid, Ct), jnp.float32)
    b1 = 0.1 * jax.random.normal(k2, (Cmid,), jnp.float32)
    w2 = 0.3 * jax.random.normal(k3, (Ct, Cmid), jnp.float32)
    b2 = 0.1 * jax.random.normal(k4, (Ct,), jnp.float32)
    # BatchNorm3d fresh-init params / running stats (eval mode).
    g1, be1 = jnp.ones((Cmid,), jnp.float32), jnp.zeros((Cmid,), jnp.float32)
    rm1, rv1 = jnp.zeros((Cmid,), jnp.float32), jnp.ones((Cmid,), jnp.float32)
    g2, be2 = jnp.ones((Ct,), jnp.float32), jnp.zeros((Ct,), jnp.float32)
    rm2, rv2 = jnp.zeros((Ct,), jnp.float32), jnp.ones((Ct,), jnp.float32)
    return (w1, b1, g1, be1, rm1, rv1, w2, b2, g2, be2, rm2, rv2)


if __name__ == "__main__":
    sources = ["top_IR", "front_IR"]          # 2 sources -> fusion_steps = 1
    in_channels = 4
    key = jax.random.PRNGKey(0)
    kp, kx = jax.random.split(key)
    params = make_params(kp, in_channels, len(sources), r=4.0)

    # Config A: D*H*W = 3200 = 25*128 -> exercises the small-R row-fold path
    # (single reduction step, no mask).  Config B: D*H*W = 8856 (not a
    # multiple of 128, spans 3 lane tiles) -> exercises the multi-step
    # reduction with the masked tail tile and the narrow accumulator.
    configs = [(2, 8, 20, 20), (2, 9, 24, 41)]
    for (N, D, H, W) in configs:
        k1, k2, kx = jax.random.split(kx, 3)
        x_dict = {
            "front_IR": jax.random.normal(
                k1, (N, in_channels, D, H, W), jnp.float32),
            "top_IR": jax.random.normal(
                k2, (N, in_channels, D, H, W), jnp.float32),
        }
        out = jax.block_until_ready(se_forward(x_dict, sources, params))
        ref = se_reference(x_dict, sources, params)
        assert out.shape == (N, in_channels), out.shape
        assert jnp.allclose(out, ref, atol=1e-4, rtol=1e-4), (out, ref)

    print("KERNEL_OK")
</pallas_src>

<mosaic_0001>
module attributes {stable_mosaic.version = 11 : i64} {
  func.func @_fused_mean_kernel(%arg0: i32, %arg1: i32, %arg2: memref<200x128xf32, #tpu.memory_space<vmem>>, %arg3: memref<200x128xf32, #tpu.memory_space<vmem>>, %arg4: memref<200x1xf32, #tpu.memory_space<vmem>>, %arg5: memref<200x1xf32, #tpu.memory_space<vmem>>) attributes {dimension_semantics = [#tpu.dimension_semantics<parallel>, #tpu.dimension_semantics<arbitrary>], iteration_bounds = array<i64: 1, 1>, scalar_prefetch = 0 : i64, scratch_operands = 0 : i64, tpu.core_type = #tpu.core_type<tc>, window_params = [{transform_indices = @transform_0, window_bounds = array<i64: 200, 128>}, {transform_indices = @transform_1, window_bounds = array<i64: 200, 128>}, {transform_indices = @transform_2, window_bounds = array<i64: 200, 1>}, {transform_indices = @transform_3, window_bounds = array<i64: 200, 1>}]} {
    %c0 = arith.constant 0 : index
    %c0_0 = arith.constant 0 : index
    %0 = vector.load %arg2[%c0, %c0_0] : memref<200x128xf32, #tpu.memory_space<vmem>>, vector<200x128xf32>
    %cst = arith.constant dense<0.000000e+00> : vector<200xf32>
    %1 = vector.multi_reduction <add>, %0, %cst [1] : vector<200x128xf32> to vector<200xf32>
    %2 = vector.shape_cast %1 : vector<200xf32> to vector<200x1xf32>
    %cst_1 = arith.constant 3.125000e-04 : f32
    %3 = vector.broadcast %cst_1 : f32 to vector<200x1xf32>
    %4 = arith.mulf %2, %3 : vector<200x1xf32>
    %c0_2 = arith.constant 0 : index
    %c0_3 = arith.constant 0 : index
    %5 = vector.load %arg4[%c0_2, %c0_3] : memref<200x1xf32, #tpu.memory_space<vmem>>, vector<200x1xf32>
    tpu.vector_store %arg4[%c0_2, %c0_3], %4 {strides = array<i32>} : memref<200x1xf32, #tpu.memory_space<vmem>>, vector<200x1xf32>,
    %c0_4 = arith.constant 0 : index
    %c0_5 = arith.constant 0 : index
    %6 = vector.load %arg3[%c0_4, %c0_5] : memref<200x128xf32, #tpu.memory_space<vmem>>, vector<200x128xf32>
    %cst_6 = arith.constant dense<0.000000e+00> : vector<200xf32>
    %7 = vector.multi_reduction <add>, %6, %cst_6 [1] : vector<200x128xf32> to vector<200xf32>
    %8 = vector.shape_cast %7 : vector<200xf32> to vector<200x1xf32>
    %cst_7 = arith.constant 3.125000e-04 : f32
    %9 = vector.broadcast %cst_7 : f32 to vector<200x1xf32>
    %10 = arith.mulf %8, %9 : vector<200x1xf32>
    %c0_8 = arith.constant 0 : index
    %c0_9 = arith.constant 0 : index
    %11 = vector.load %arg5[%c0_8, %c0_9] : memref<200x1xf32, #tpu.memory_space<vmem>>, vector<200x1xf32>
    tpu.vector_store %arg5[%c0_8, %c0_9], %10 {strides = array<i32>} : memref<200x1xf32, #tpu.memory_space<vmem>>, vector<200x1xf32>,
    return
  }
  func.func @transform_0(%arg0: i32, %arg1: i32) -> (i32, i32) {
    %c0_i32 = arith.constant 0 : i32
    return %arg0, %arg1 : i32, i32
  }
  func.func @transform_1(%arg0: i32, %arg1: i32) -> (i32, i32) {
    %c0_i32 = arith.constant 0 : i32
    return %arg0, %arg1 : i32, i32
  }
  func.func @transform_2(%arg0: i32, %arg1: i32) -> (i32, i32) {
    %c0_i32 = arith.constant 0 : i32
    %c0_i32_0 = arith.constant 0 : i32
    return %arg0, %c0_i32 : i32, i32
  }
  func.func @transform_3(%arg0: i32, %arg1: i32) -> (i32, i32) {
    %c0_i32 = arith.constant 0 : i32
    %c0_i32_0 = arith.constant 0 : i32
    return %arg0, %c0_i32 : i32, i32
  }
}

</mosaic_0001>

<bundles_post_ra>
// kernel: tpu_custom_call.1
= control target key start
LH: loop header
LB: loop body
LE: loop exit
PB: predicated region body
PF: predicated region fallthrough
CT: control target
= control target key end

     0   :  { %9 = vsyncpa [#allocation3], 0  ;;  %s592_s0 = inlined_call_operand.hbm [shape: f32[200,128], index: 0, kind: input, shape index: {}]   ;;  %s593_s1 = inlined_call_operand.hbm [shape: f32[200,128], index: 1, kind: input, shape index: {}]   ;;  %s594_s2 = inlined_call_operand.vmem [shape: f32[200,1], index: 2, kind: output, shape index: {0}]   ;;  %s595_s3 = inlined_call_operand.vmem [shape: f32[200,1], index: 3, kind: output, shape index: {1}]  }
   0x1   :  { %s15_s14 = sshll.u32 %s592_s0, 4  ;;  %s16_s14 = int_to_ptr.hbm [resolvable:$true] %s15_s14 }
   0x2   :  { %10 = vsyncpa [#allocation5], 0  ;;  %s362_s15 = smov [#allocation2]   ;;  %s28_s19 = sshll.u32 %s593_s1, 4  ;;  %s29_s19 = int_to_ptr.hbm [resolvable:$true] %s28_s19 }
   0x3   :  { %s17_s16 = sshll.u32 %s362_s15, 4  ;;  %s363_s20 = smov 128   ;;  %s18_s16 = int_to_ptr.vmem [resolvable:$true] %s17_s16 }
   0x4   :  { %s364_s21 = smov 8   ;;  %s365_s22 = smov [#allocation4]  }
   0x5   :  { %23 = dma.hbm_to_vmem [thread:$0]  %s16_s14, 3200, %s18_s16, [#allocation3], %s363_s20, %s363_s20, %s364_s21  }
   0x6   :  { %s30_s23 = sshll.u32 %s365_s22, 4  ;;  %s31_s23 = int_to_ptr.vmem [resolvable:$true] %s30_s23 }
   0x7   :  { %36 = dma.hbm_to_vmem [thread:$0]  %s29_s19, 3200, %s31_s23, [#allocation5], %s363_s20, %s363_s20, %s364_s21  }
   0x8   :  { %358 = dma.done.wait [#allocation3], 3200  }
   0x9   :  { %359 = vsyncadd [#allocation3], 4294964096 }
   0xa   :  { %360 = dma.done.wait [#allocation5], 3200  }
   0xb   :  { %361 = vsyncadd [#allocation5], 4294964096  ;;  %v47_v0 = vld [vmem:[#allocation2 + $0x10] sm:$0xff]  ;;  %v45_v1 = vld [vmem:[#allocation2] sm:$0xff]  ;;  %vm145_vm0 = vcmask 7168  }
   0xc   :  { %v49_v2 = vld [vmem:[#allocation2 + $0x20] sm:$0xff]  ;;  %74 = vadd.xlane.f32.xlu1 %v47_v0  ;;  %70 = vadd.xlane.f32.xlu0 %v45_v1  ;;  %v48_v3 = vld [vmem:[#allocation2 + $0x18] sm:$0xff]  ;;  %v46_v4 = vld [vmem:[#allocation2 + $0x8] sm:$0xff] }
   0xd   :  { %78 = vadd.xlane.f32.xlu2 %v49_v2  ;;  %v50_v5 = vld [vmem:[#allocation2 + $0x28] sm:$0xff]  ;;  %v52_v6 = vld [vmem:[#allocation2 + $0x38] sm:$0xff]  ;;  %v51_v7 = vld [vmem:[#allocation2 + $0x30] sm:$0xff] }
   0xe   :  { %v53_v8 = vld [vmem:[#allocation2 + $0x40] sm:$0xff]  ;;  %v55_v9 = vld [vmem:[#allocation2 + $0x50] sm:$0xff]  ;;  %v54_v10 = vld [vmem:[#allocation2 + $0x48] sm:$0xff] }
   0xf   :  { %v56_v11 = vld [vmem:[#allocation2 + $0x58] sm:$0xff]  ;;  %v58_v12 = vld [vmem:[#allocation2 + $0x68] sm:$0xff]  ;;  %v57_v13 = vld [vmem:[#allocation2 + $0x60] sm:$0xff] }
  0x10   :  { %v59_v14 = vld [vmem:[#allocation2 + $0x70] sm:$0xff]  ;;  %v61_v15 = vld [vmem:[#allocation2 + $0x80] sm:$0xff]  ;;  %v60_v16 = vld [vmem:[#allocation2 + $0x78] sm:$0xff] }
  0x11   :  { %v62_v17 = vld [vmem:[#allocation2 + $0x88] sm:$0xff]  ;;  %v64_v18 = vld [vmem:[#allocation2 + $0x98] sm:$0xff]  ;;  %v63_v19 = vld [vmem:[#allocation2 + $0x90] sm:$0xff] }
  0x12   :  { %v65_v20 = vld [vmem:[#allocation2 + $0xa0] sm:$0xff]  ;;  %v67_v21 = vld [vmem:[#allocation2 + $0xb0] sm:$0xff]  ;;  %v66_v22 = vld [vmem:[#allocation2 + $0xa8] sm:$0xff] }
  0x13   :  { %v68_v23 = vld [vmem:[#allocation2 + $0xb8] sm:$0xff]  ;;  %v171_v24 = vld [vmem:[#allocation4] sm:$0xff]  ;;  %v69_v25 = vld [vmem:[#allocation2 + $0xc0] sm:$0xff] }
  0x14   :  { %76 = vadd.xlane.f32.xlu1 %v48_v3  ;;  %72 = vadd.xlane.f32.xlu0 %v46_v4  ;;  %v172_v26 = vld [vmem:[#allocation4 + $0x8] sm:$0xff]  ;;  %v174_v27 = vld [vmem:[#allocation4 + $0x18] sm:$0xff]  ;;  %v173_v28 = vld [vmem:[#allocation4 + $0x10] sm:$0xff] }
  0x15   :  { %80 = vadd.xlane.f32.xlu2 %v50_v5  ;;  %v175_v29 = vld [vmem:[#allocation4 + $0x20] sm:$0xff]  ;;  %v177_v30 = vld [vmem:[#allocation4 + $0x30] sm:$0xff]  ;;  %v176_v31 = vld [vmem:[#allocation4 + $0x28] sm:$0xff] }
  0x16   :  { %v178_v32 = vld [vmem:[#allocation4 + $0x38] sm:$0xff]  ;;  %v180_v33 = vld [vmem:[#allocation4 + $0x48] sm:$0xff]  ;;  %v179_v34 = vld [vmem:[#allocation4 + $0x40] sm:$0xff] }
  0x17   :  { %v181_v35 = vld [vmem:[#allocation4 + $0x50] sm:$0xff]  ;;  %v183_v36 = vld [vmem:[#allocation4 + $0x60] sm:$0xff]  ;;  %v182_v37 = vld [vmem:[#allocation4 + $0x58] sm:$0xff] }
  0x18   :  { %v184_v38 = vld [vmem:[#allocation4 + $0x68] sm:$0xff]  ;;  %v186_v39 = vld [vmem:[#allocation4 + $0x78] sm:$0xff]  ;;  %v185_v40 = vld [vmem:[#allocation4 + $0x70] sm:$0xff] }
  0x19   :  { %v187_v41 = vld [vmem:[#allocation4 + $0x80] sm:$0xff]  ;;  %v189_v42 = vld [vmem:[#allocation4 + $0x90] sm:$0xff]  ;;  %v188_v43 = vld [vmem:[#allocation4 + $0x88] sm:$0xff] }
  0x1a   :  { %v190_v44 = vld [vmem:[#allocation4 + $0x98] sm:$0xff]  ;;  %v192_v50 = vld [vmem:[#allocation4 + $0xa8] sm:$0xff]  ;;  %v191_v51 = vld [vmem:[#allocation4 + $0xa0] sm:$0xff] }
  0x1b   :  { %v193_v53 = vld [vmem:[#allocation4 + $0xb0] sm:$0xff]  ;;  %v195_v59 = vld [vmem:[#allocation4 + $0xc0] sm:$0xff]  ;;  %v194_v60 = vld [vmem:[#allocation4 + $0xb8] sm:$0xff] }
  0x1c   :  { %84 = vadd.xlane.f32.xlu1 %v52_v6  ;;  %82 = vadd.xlane.f32.xlu0 %v51_v7 }
  0x1d   :  { %86 = vadd.xlane.f32.xlu2 %v53_v8 }
  0x24   :  { %90 = vadd.xlane.f32.xlu1 %v55_v9  ;;  %88 = vadd.xlane.f32.xlu0 %v54_v10 }
  0x25   :  { %92 = vadd.xlane.f32.xlu2 %v56_v11 }
  0x2c   :  { %96 = vadd.xlane.f32.xlu1 %v58_v12  ;;  %94 = vadd.xlane.f32.xlu0 %v57_v13 }
  0x2d   :  { %98 = vadd.xlane.f32.xlu2 %v59_v14 }
  0x34   :  { %102 = vadd.xlane.f32.xlu1 %v61_v15  ;;  %100 = vadd.xlane.f32.xlu0 %v60_v16 }
  0x35   :  { %104 = vadd.xlane.f32.xlu2 %v62_v17 }
  0x3c   :  { %108 = vadd.xlane.f32.xlu1 %v64_v18  ;;  %106 = vadd.xlane.f32.xlu0 %v63_v19 }
  0x3d   :  { %110 = vadd.xlane.f32.xlu2 %v65_v20 }
  0x44   :  { %114 = vadd.xlane.f32.xlu1 %v67_v21  ;;  %112 = vadd.xlane.f32.xlu0 %v66_v22 }
  0x45   :  { %116 = vadd.xlane.f32.xlu2 %v68_v23 }
  0x4c   :  { %196 = vadd.xlane.f32.xlu1 %v171_v24  ;;  %118 = vadd.xlane.f32.xlu0 %v69_v25 }
  0x4d   :  { %198 = vadd.xlane.f32.xlu2 %v172_v26 }
  0x54   :  { %202 = vadd.xlane.f32.xlu1 %v174_v27  ;;  %200 = vadd.xlane.f32.xlu0 %v173_v28 }
  0x55   :  { %204 = vadd.xlane.f32.xlu2 %v175_v29 }
  0x5c   :  { %208 = vadd.xlane.f32.xlu1 %v177_v30  ;;  %206 = vadd.xlane.f32.xlu0 %v176_v31 }
  0x5d   :  { %210 = vadd.xlane.f32.xlu2 %v178_v32 }
  0x64   :  { %214 = vadd.xlane.f32.xlu1 %v180_v33  ;;  %212 = vadd.xlane.f32.xlu0 %v179_v34 }
  0x65   :  { %216 = vadd.xlane.f32.xlu2 %v181_v35 }
  0x6c   :  { %220 = vadd.xlane.f32.xlu1 %v183_v36  ;;  %218 = vadd.xlane.f32.xlu0 %v182_v37 }
  0x6d   :  { %222 = vadd.xlane.f32.xlu2 %v184_v38 }
  0x74   :  { %226 = vadd.xlane.f32.xlu1 %v186_v39  ;;  %224 = vadd.xlane.f32.xlu0 %v185_v40 }
  0x75   :  { %228 = vadd.xlane.f32.xlu2 %v187_v41 }
  0x7c   :  { %232 = vadd.xlane.f32.xlu1 %v189_v42  ;;  %230 = vadd.xlane.f32.xlu0 %v188_v43 }
  0x7d   :  { %234 = vadd.xlane.f32.xlu2 %v190_v44 }
  0x7f   :  { %v75_v45 = vpop.xlane.xlu1 %74  ;;  %v71_v46 = vpop.xlane.xlu0 %70 }
  0x80   :  { %v122_v47 = vmul.f32 0.0003125, %v75_v45  ;;  %v120_v48 = vmul.f32 0.0003125, %v71_v46  ;;  %v79_v49 = vpop.xlane.xlu2 %78 }
  0x81   :  { %v124_v52 = vmul.f32 0.0003125, %v79_v49 }
  0x82   :  { %148 = vst.msk [vmem:[%s594_s2 + $0x10] sm:$0xff] %vm145_vm0, %v122_v47 }
  0x83   :  { %146 = vst.msk [vmem:[%s594_s2] sm:$0xff] %vm145_vm0, %v120_v48 }
  0x84   :  { %238 = vadd.xlane.f32.xlu1 %v192_v50  ;;  %236 = vadd.xlane.f32.xlu0 %v191_v51  ;;  %150 = vst.msk [vmem:[%s594_s2 + $0x20] sm:$0xff] %vm145_vm0, %v124_v52 }
  0x85   :  { %240 = vadd.xlane.f32.xlu2 %v193_v53 }
  0x87   :  { %v77_v54 = vpop.xlane.xlu1 %76  ;;  %v73_v55 = vpop.xlane.xlu0 %72 }
  0x88   :  { %v123_v56 = vmul.f32 0.0003125, %v77_v54  ;;  %v121_v57 = vmul.f32 0.0003125, %v73_v55  ;;  %v81_v58 = vpop.xlane.xlu2 %80 }
  0x89   :  { %v125_v61 = vmul.f32 0.0003125, %v81_v58 }
  0x8a   :  { %149 = vst.msk [vmem:[%s594_s2 + $0x18] sm:$0xff] %vm145_vm0, %v123_v56 }
  0x8b   :  { %147 = vst.msk [vmem:[%s594_s2 + $0x8] sm:$0xff] %vm145_vm0, %v121_v57 }
  0x8c   :  { %244 = vadd.xlane.f32.xlu1 %v195_v59  ;;  %242 = vadd.xlane.f32.xlu0 %v194_v60  ;;  %151 = vst.msk [vmem:[%s594_s2 + $0x28] sm:$0xff] %vm145_vm0, %v125_v61 }
  0x8f   :  { %v85_v62 = vpop.xlane.xlu1 %84  ;;  %v83_v63 = vpop.xlane.xlu0 %82 }
  0x90   :  { %v127_v0 = vmul.f32 0.0003125, %v85_v62  ;;  %v126_v1 = vmul.f32 0.0003125, %v83_v63  ;;  %v87_v2 = vpop.xlane.xlu2 %86 }
  0x91   :  { %v128_v3 = vmul.f32 0.0003125, %v87_v2 }
  0x92   :  { %153 = vst.msk [vmem:[%s594_s2 + $0x38] sm:$0xff] %vm145_vm0, %v127_v0 }
  0x93   :  { %152 = vst.msk [vmem:[%s594_s2 + $0x30] sm:$0xff] %vm145_vm0, %v126_v1 }
  0x94   :  { %154 = vst.msk [vmem:[%s594_s2 + $0x40] sm:$0xff] %vm145_vm0, %v128_v3 }
  0x97   :  { %v91_v4 = vpop.xlane.xlu1 %90  ;;  %v89_v5 = vpop.xlane.xlu0 %88 }
  0x98   :  { %v130_v6 = vmul.f32 0.0003125, %v91_v4  ;;  %v129_v7 = vmul.f32 0.0003125, %v89_v5  ;;  %v93_v8 = vpop.xlane.xlu2 %92 }
  0x99   :  { %v131_v9 = vmul.f32 0.0003125, %v93_v8 }
  0x9a   :  { %156 = vst.msk [vmem:[%s594_s2 + $0x50] sm:$0xff] %vm145_vm0, %v130_v6 }
  0x9b   :  { %155 = vst.msk [vmem:[%s594_s2 + $0x48] sm:$0xff] %vm145_vm0, %v129_v7 }
  0x9c   :  { %157 = vst.msk [vmem:[%s594_s2 + $0x58] sm:$0xff] %vm145_vm0, %v131_v9 }
  0x9f   :  { %v97_v10 = vpop.xlane.xlu1 %96  ;;  %v95_v11 = vpop.xlane.xlu0 %94 }
  0xa0   :  { %v133_v12 = vmul.f32 0.0003125, %v97_v10  ;;  %v132_v13 = vmul.f32 0.0003125, %v95_v11  ;;  %v99_v14 = vpop.xlane.xlu2 %98 }
  0xa1   :  { %v134_v15 = vmul.f32 0.0003125, %v99_v14 }
  0xa2   :  { %159 = vst.msk [vmem:[%s594_s2 + $0x68] sm:$0xff] %vm145_vm0, %v133_v12 }
  0xa3   :  { %158 = vst.msk [vmem:[%s594_s2 + $0x60] sm:$0xff] %vm145_vm0, %v132_v13 }
  0xa4   :  { %160 = vst.msk [vmem:[%s594_s2 + $0x70] sm:$0xff] %vm145_vm0, %v134_v15 }
  0xa7   :  { %v103_v16 = vpop.xlane.xlu1 %102  ;;  %v101_v17 = vpop.xlane.xlu0 %100 }
  0xa8   :  { %v136_v18 = vmul.f32 0.0003125, %v103_v16  ;;  %v135_v19 = vmul.f32 0.0003125, %v101_v17  ;;  %v105_v20 = vpop.xlane.xlu2 %104 }
  0xa9   :  { %v137_v21 = vmul.f32 0.0003125, %v105_v20 }
  0xaa   :  { %162 = vst.msk [vmem:[%s594_s2 + $0x80] sm:$0xff] %vm145_vm0, %v136_v18 }
  0xab   :  { %161 = vst.msk [vmem:[%s594_s2 + $0x78] sm:$0xff] %vm145_vm0, %v135_v19 }
  0xac   :  { %163 = vst.msk [vmem:[%s594_s2 + $0x88] sm:$0xff] %vm145_vm0, %v137_v21 }
  0xaf   :  { %v109_v22 = vpop.xlane.xlu1 %108  ;;  %v107_v23 = vpop.xlane.xlu0 %106 }
  0xb0   :  { %v139_v24 = vmul.f32 0.0003125, %v109_v22  ;;  %v138_v25 = vmul.f32 0.0003125, %v107_v23  ;;  %v111_v26 = vpop.xlane.xlu2 %110 }
  0xb1   :  { %v140_v27 = vmul.f32 0.0003125, %v111_v26 }
  0xb2   :  { %165 = vst.msk [vmem:[%s594_s2 + $0x98] sm:$0xff] %vm145_vm0, %v139_v24 }
  0xb3   :  { %164 = vst.msk [vmem:[%s594_s2 + $0x90] sm:$0xff] %vm145_vm0, %v138_v25 }
  0xb4   :  { %166 = vst.msk [vmem:[%s594_s2 + $0xa0] sm:$0xff] %vm145_vm0, %v140_v27 }
  0xb7   :  { %v115_v28 = vpop.xlane.xlu1 %114  ;;  %v113_v29 = vpop.xlane.xlu0 %112 }
  0xb8   :  { %v142_v30 = vmul.f32 0.0003125, %v115_v28  ;;  %v141_v31 = vmul.f32 0.0003125, %v113_v29  ;;  %v117_v32 = vpop.xlane.xlu2 %116 }
  0xb9   :  { %v143_v33 = vmul.f32 0.0003125, %v117_v32 }
  0xba   :  { %168 = vst.msk [vmem:[%s594_s2 + $0xb0] sm:$0xff] %vm145_vm0, %v142_v30 }
  0xbb   :  { %167 = vst.msk [vmem:[%s594_s2 + $0xa8] sm:$0xff] %vm145_vm0, %v141_v31 }
  0xbc   :  { %169 = vst.msk [vmem:[%s594_s2 + $0xb8] sm:$0xff] %vm145_vm0, %v143_v33 }
  0xbf   :  { %v197_v34 = vpop.xlane.xlu1 %196  ;;  %v119_v35 = vpop.xlane.xlu0 %118 }
  0xc0   :  { %v246_v36 = vmul.f32 0.0003125, %v197_v34  ;;  %v144_v37 = vmul.f32 0.0003125, %v119_v35  ;;  %v199_v38 = vpop.xlane.xlu2 %198 }
  0xc1   :  { %v247_v39 = vmul.f32 0.0003125, %v199_v38 }
  0xc2   :  { %271 = vst.msk [vmem:[%s595_s3] sm:$0xff] %vm145_vm0, %v246_v36 }
  0xc3   :  { %170 = vst.msk [vmem:[%s594_s2 + $0xc0] sm:$0xff] %vm145_vm0, %v144_v37 }
  0xc4   :  { %272 = vst.msk [vmem:[%s595_s3 + $0x8] sm:$0xff] %vm145_vm0, %v247_v39 }
  0xc7   :  { %v203_v40 = vpop.xlane.xlu1 %202  ;;  %v201_v41 = vpop.xlane.xlu0 %200 }
  0xc8   :  { %v249_v42 = vmul.f32 0.0003125, %v203_v40  ;;  %v248_v43 = vmul.f32 0.0003125, %v201_v41  ;;  %v205_v44 = vpop.xlane.xlu2 %204 }
  0xc9   :  { %v250_v45 = vmul.f32 0.0003125, %v205_v44 }
  0xca   :  { %274 = vst.msk [vmem:[%s595_s3 + $0x18] sm:$0xff] %vm145_vm0, %v249_v42 }
  0xcb   :  { %273 = vst.msk [vmem:[%s595_s3 + $0x10] sm:$0xff] %vm145_vm0, %v248_v43 }
  0xcc   :  { %275 = vst.msk [vmem:[%s595_s3 + $0x20] sm:$0xff] %vm145_vm0, %v250_v45 }
  0xcf   :  { %v209_v46 = vpop.xlane.xlu1 %208  ;;  %v207_v47 = vpop.xlane.xlu0 %206 }
  0xd0   :  { %v252_v48 = vmul.f32 0.0003125, %v209_v46  ;;  %v251_v49 = vmul.f32 0.0003125, %v207_v47  ;;  %v211_v50 = vpop.xlane.xlu2 %210 }
  0xd1   :  { %v253_v51 = vmul.f32 0.0003125, %v211_v50 }
  0xd2   :  { %277 = vst.msk [vmem:[%s595_s3 + $0x30] sm:$0xff] %vm145_vm0, %v252_v48 }
  0xd3   :  { %276 = vst.msk [vmem:[%s595_s3 + $0x28] sm:$0xff] %vm145_vm0, %v251_v49 }
  0xd4   :  { %278 = vst.msk [vmem:[%s595_s3 + $0x38] sm:$0xff] %vm145_vm0, %v253_v51 }
  0xd7   :  { %v215_v52 = vpop.xlane.xlu1 %214  ;;  %v213_v53 = vpop.xlane.xlu0 %212 }
  0xd8   :  { %v255_v54 = vmul.f32 0.0003125, %v215_v52  ;;  %v254_v55 = vmul.f32 0.0003125, %v213_v53  ;;  %v217_v56 = vpop.xlane.xlu2 %216 }
  0xd9   :  { %v256_v57 = vmul.f32 0.0003125, %v217_v56 }
  0xda   :  { %280 = vst.msk [vmem:[%s595_s3 + $0x48] sm:$0xff] %vm145_vm0, %v255_v54 }
  0xdb   :  { %279 = vst.msk [vmem:[%s595_s3 + $0x40] sm:$0xff] %vm145_vm0, %v254_v55 }
  0xdc   :  { %281 = vst.msk [vmem:[%s595_s3 + $0x50] sm:$0xff] %vm145_vm0, %v256_v57 }
  0xdf   :  { %v221_v58 = vpop.xlane.xlu1 %220  ;;  %v219_v59 = vpop.xlane.xlu0 %218 }
  0xe0   :  { %v258_v60 = vmul.f32 0.0003125, %v221_v58  ;;  %v257_v61 = vmul.f32 0.0003125, %v219_v59  ;;  %v223_v62 = vpop.xlane.xlu2 %222 }
  0xe1   :  { %v259_v63 = vmul.f32 0.0003125, %v223_v62 }
  0xe2   :  { %283 = vst.msk [vmem:[%s595_s3 + $0x60] sm:$0xff] %vm145_vm0, %v258_v60 }
  0xe3   :  { %282 = vst.msk [vmem:[%s595_s3 + $0x58] sm:$0xff] %vm145_vm0, %v257_v61 }
  0xe4   :  { %284 = vst.msk [vmem:[%s595_s3 + $0x68] sm:$0xff] %vm145_vm0, %v259_v63 }
  0xe7   :  { %v227_v0 = vpop.xlane.xlu1 %226  ;;  %v225_v1 = vpop.xlane.xlu0 %224 }
  0xe8   :  { %v261_v2 = vmul.f32 0.0003125, %v227_v0  ;;  %v260_v3 = vmul.f32 0.0003125, %v225_v1  ;;  %v229_v4 = vpop.xlane.xlu2 %228 }
  0xe9   :  { %v262_v5 = vmul.f32 0.0003125, %v229_v4 }
  0xea   :  { %286 = vst.msk [vmem:[%s595_s3 + $0x78] sm:$0xff] %vm145_vm0, %v261_v2 }
  0xeb   :  { %285 = vst.msk [vmem:[%s595_s3 + $0x70] sm:$0xff] %vm145_vm0, %v260_v3 }
  0xec   :  { %287 = vst.msk [vmem:[%s595_s3 + $0x80] sm:$0xff] %vm145_vm0, %v262_v5 }
  0xef   :  { %v233_v6 = vpop.xlane.xlu1 %232  ;;  %v231_v7 = vpop.xlane.xlu0 %230 }
  0xf0   :  { %v264_v8 = vmul.f32 0.0003125, %v233_v6  ;;  %v263_v9 = vmul.f32 0.0003125, %v231_v7  ;;  %v235_v10 = vpop.xlane.xlu2 %234 }
  0xf1   :  { %v265_v11 = vmul.f32 0.0003125, %v235_v10 }
  0xf2   :  { %289 = vst.msk [vmem:[%s595_s3 + $0x90] sm:$0xff] %vm145_vm0, %v264_v8 }
  0xf3   :  { %288 = vst.msk [vmem:[%s595_s3 + $0x88] sm:$0xff] %vm145_vm0, %v263_v9 }
  0xf4   :  { %290 = vst.msk [vmem:[%s595_s3 + $0x98] sm:$0xff] %vm145_vm0, %v265_v11 }
  0xf7   :  { %v239_v12 = vpop.xlane.xlu1 %238  ;;  %v237_v13 = vpop.xlane.xlu0 %236 }
  0xf8   :  { %v267_v14 = vmul.f32 0.0003125, %v239_v12  ;;  %v266_v15 = vmul.f32 0.0003125, %v237_v13  ;;  %v241_v16 = vpop.xlane.xlu2 %240 }
  0xf9   :  { %v268_v17 = vmul.f32 0.0003125, %v241_v16 }
  0xfa   :  { %292 = vst.msk [vmem:[%s595_s3 + $0xa8] sm:$0xff] %vm145_vm0, %v267_v14 }
  0xfb   :  { %291 = vst.msk [vmem:[%s595_s3 + $0xa0] sm:$0xff] %vm145_vm0, %v266_v15 }
  0xfc   :  { %293 = vst.msk [vmem:[%s595_s3 + $0xb0] sm:$0xff] %vm145_vm0, %v268_v17 }
  0xff   :  { %v245_v18 = vpop.xlane.xlu1 %244  ;;  %v243_v19 = vpop.xlane.xlu0 %242 }
 0x100   :  { %v270_v20 = vmul.f32 0.0003125, %v245_v18  ;;  %v269_v21 = vmul.f32 0.0003125, %v243_v19 }
 0x102   :  { %295 = vst.msk [vmem:[%s595_s3 + $0xc0] sm:$0xff] %vm145_vm0, %v270_v20 }
 0x103   :  { %294 = vst.msk [vmem:[%s595_s3 + $0xb8] sm:$0xff] %vm145_vm0, %v269_v21 }
 0x104   :  { %304 = vsyncpa [#allocation3], 1 }
 0x105   :  { %305 = vsyncpa [#allocation5], 1 }

</bundles_post_ra>
